<compile_context>
chip_gen: v7x
topology: tpu7x:2x2x1
jax: 0.10.0
libtpu: 0.0.40
codegen_flags: <defaults>
</compile_context>

<pallas_src>
import math
from functools import partial
from typing import Optional, Tuple

import jax
import jax.numpy as jnp
from jax.experimental import pallas as pl
from jax.experimental.pallas import tpu as pltpu


# ---------------------------------------------------------------------------
# Generation-aware VMEM sizing (v5e/v6e: 128 MiB, v7x: 64 MiB per TensorCore)
# ---------------------------------------------------------------------------
def _tpu_vmem_capacity_bytes() -> int:
    try:
        return int(pltpu.get_tpu_info().vmem_capacity_bytes)
    except Exception:                 # unknown host / old runtime: assume v7x-class
        return 64 << 20


_VMEM_CAP = _tpu_vmem_capacity_bytes()
# Scoped limit requested from the compiler (leave headroom below physical VMEM).
_VMEM_LIMIT = int(min(_VMEM_CAP * 3 // 4, 100 << 20))
# Working-set target used when sizing tiles (double-buffering accounted below).
_VMEM_BUDGET = int(min(_VMEM_CAP // 2, 44 << 20))


# ---------------------------------------------------------------------------
# Tile-size helpers
# ---------------------------------------------------------------------------
def _pick_row_tile(h, w, cin, cout, in_item, out_item, n_batch, budget):
    """Row tile for the folded kernel: largest tile whose working set fits."""
    wp = w + 1

    def working_set(tr):
        io = 2 * (tr + 1) * wp * cin * in_item          # double-buffered xm + xe
        out = 2 * tr * w * cout * out_item              # double-buffered output
        wgt = 2 * (4 * cin * cout * in_item + cout * 4)
        tmp = 3 * tr * wp * cin * in_item + 2 * tr * w * cout * 4   # slices + f32 acc
        return io + out + wgt + tmp

    tr = max((t for t in range(1, h + 1) if working_set(t) <= budget), default=1)
    # Keep >=2 parallel grid steps so both v7x TensorCores get work.
    if n_batch == 1 and h > 1:
        tr = min(tr, (h + 1) // 2)
    # Prefer an exact divisor of h (no ragged tile) when a large one exists.
    div = max((t for t in range(1, tr + 1) if h % t == 0), default=1)
    if div * 2 >= tr:
        tr = div
    return max(tr, 1)


def _pick_k_tile(k, tk_max=2048):
    """K tile for the fallback matmul (multiple of 128, exact divisor of K)."""
    if k <= tk_max:
        return k
    for d in range(tk_max - tk_max % 128, 0, -128):
        if k % d == 0:
            return d
    return k


def _pick_m_tile(m, tk, cout, in_item, out_item, budget, tm_max=2048):
    """M tile for the fallback matmul (multiple of 8, or the full M if small)."""
    def ws(t):
        return (2 * (t * tk + tk * cout) * in_item
                + 2 * t * cout * out_item + t * cout * 4)

    tm = min(m, tm_max)
    while tm > 8 and ws(tm) > budget:
        tm = max(8, (tm // 2) // 8 * 8)
    return tm


# ---------------------------------------------------------------------------
# Folded fast path: fused 2x2 stride-1 conv (nearest-2x + 3x3/s2/p1 collapsed)
# ---------------------------------------------------------------------------
def _fold_conv_kernel(xm_ref, xe_ref, w_ref, b_ref, o_ref):
    """Fused 4-tap conv on a tile of `tr` output rows (no VMEM scratch copy).

    xm_ref: (1, tr, Wp, Cin)  padded-input rows [r*tr, r*tr + tr)
    xe_ref: (1, 1,  Wp, Cin)  padded-input row   r*tr + tr (overlap row)
    w_ref : (2, 2, Cin, Cout) folded weights
    b_ref : (1, Cout)         bias (f32)
    o_ref : (1, tr, ow, Cout) output rows [r*tr, r*tr + tr)
    """
    _, tr, wp, cin = xm_ref.shape
    ow, cout = o_ref.shape[2], o_ref.shape[3]

    xm = xm_ref[0]                               # (tr, Wp, Cin)
    xe = xe_ref[0]                               # (1,  Wp, Cin)
    # kw taps: the left zero-pad column sits at width index 0 of the padded rows.
    xm0, xm1 = xm[:, 0:ow, :], xm[:, 1:ow + 1, :]
    xe0, xe1 = xe[:, 0:ow, :], xe[:, 1:ow + 1, :]
    bias = b_ref[...]                            # (1, Cout) f32

    dot = partial(jnp.dot, preferred_element_type=jnp.float32)

    # kh=0 taps: every output row of the tile reads its own xm row.
    acc = dot(xm0.reshape(tr * ow, cin), w_ref[0, 0])
    acc += dot(xm1.reshape(tr * ow, cin), w_ref[0, 1])
    acc = acc.reshape(tr, ow, cout)

    # kh=1 taps: output row p reads xm row p+1; the tile's last output row reads
    # the overlap row.  Combined with two leading-axis slice stores.
    if tr > 1:
        body = dot(xm0[1:].reshape((tr - 1) * ow, cin), w_ref[1, 0])
        body += dot(xm1[1:].reshape((tr - 1) * ow, cin), w_ref[1, 1])
        o_ref[0, 0:tr - 1] = (acc[0:tr - 1] + body.reshape(tr - 1, ow, cout)
                              + bias).astype(o_ref.dtype)
    tail = dot(xe0.reshape(ow, cin), w_ref[1, 0])
    tail += dot(xe1.reshape(ow, cin), w_ref[1, 1])
    o_ref[0, tr - 1:tr] = (acc[tr - 1:tr] + tail.reshape(1, ow, cout)
                           + bias).astype(o_ref.dtype)


def _fold_conv(xp, w_fold, bias_row, tr, out_dtype):
    """xp: (N, H+1, W+1, Cin) padded NHWC; w_fold: (2,2,Cin,Cout); bias_row: (1,Cout)."""
    n, hp, wp, cin = xp.shape
    oh, ow = hp - 1, wp - 1
    cout = w_fold.shape[-1]
    row_tiles = pl.cdiv(oh, tr)
    in_item = jnp.dtype(xp.dtype).itemsize
    out_item = jnp.dtype(out_dtype).itemsize
    cost = pl.CostEstimate(
        flops=2 * 4 * n * oh * ow * cin * cout,
        transcendentals=0,
        bytes_accessed=int(xp.size * in_item + n * row_tiles * wp * cin * in_item
                           + w_fold.size * in_item + cout * 4
                           + n * oh * ow * cout * out_item))
    return pl.pallas_call(
        _fold_conv_kernel,
        out_shape=jax.ShapeDtypeStruct((n, oh, ow, cout), out_dtype),
        grid=(n, row_tiles),
        in_specs=[
            pl.BlockSpec((1, tr, wp, cin), lambda b, r: (b, r, 0, 0)),
            # Single overlap row (block size 1 on H => returned index is an element
            # offset): padded row r*tr + tr, clamped for a ragged last tile.
            pl.BlockSpec((1, 1, wp, cin),
                         lambda b, r: (b, jnp.minimum((r + 1) * tr, oh), 0, 0)),
            pl.BlockSpec((2, 2, cin, cout), lambda b, r: (0, 0, 0, 0)),
            pl.BlockSpec((1, cout), lambda b, r: (0, 0)),
        ],
        out_specs=pl.BlockSpec((1, tr, ow, cout), lambda b, r: (b, r, 0, 0)),
        compiler_params=pltpu.CompilerParams(
            dimension_semantics=("parallel", "parallel"),
            vmem_limit_bytes=_VMEM_LIMIT),
        cost_estimate=cost,
    )(xp, xp, w_fold, bias_row)


# ---------------------------------------------------------------------------
# General fallback: im2col + K-tiled matmul+bias on the MXU
# ---------------------------------------------------------------------------
def _matmul_bias_kernel(p_ref, w_ref, b_ref, o_ref, acc_ref):
    @pl.when(pl.program_id(1) == 0)
    def _():
        acc_ref[...] = jnp.zeros_like(acc_ref)

    acc_ref[...] += jnp.dot(p_ref[...], w_ref[...],
                            preferred_element_type=jnp.float32)

    @pl.when(pl.program_id(1) == pl.num_programs(1) - 1)
    def _():
        o_ref[...] = (acc_ref[...] + b_ref[...]).astype(o_ref.dtype)


def _conv_as_matmul(patches, w_mat, bias_row, out_dtype):
    """patches: (M, K); w_mat: (K, Cout); bias_row: (1, Cout) f32 -> (M, Cout)."""
    m, k = patches.shape
    cout = w_mat.shape[1]
    in_item = jnp.dtype(patches.dtype).itemsize
    out_item = jnp.dtype(out_dtype).itemsize
    tk = _pick_k_tile(k)
    tm = _pick_m_tile(m, tk, cout, in_item, out_item, _VMEM_BUDGET)
    cost = pl.CostEstimate(
        flops=2 * m * k * cout, transcendentals=0,
        bytes_accessed=int(patches.size * in_item
                           + (pl.cdiv(m, tm)) * k * cout * in_item
                           + cout * 4 + m * cout * out_item))
    # TODO(synk): fuse the im2col (9 taps of the resized activation) into this
    # kernel so the (M, 9*Cin) patch matrix never touches HBM; the exact-2x fast
    # path already avoids it entirely.
    return pl.pallas_call(
        _matmul_bias_kernel,
        out_shape=jax.ShapeDtypeStruct((m, cout), out_dtype),
        grid=(pl.cdiv(m, tm), k // tk),          # ragged last M tile masked by Pallas
        in_specs=[
            pl.BlockSpec((tm, tk), lambda i, j: (i, j)),
            pl.BlockSpec((tk, cout), lambda i, j: (j, 0)),
            pl.BlockSpec((1, cout), lambda i, j: (0, 0)),
        ],
        out_specs=pl.BlockSpec((tm, cout), lambda i, j: (i, 0)),
        scratch_shapes=[pltpu.VMEM((tm, cout), jnp.float32)],
        compiler_params=pltpu.CompilerParams(
            dimension_semantics=("parallel", "arbitrary"),
            vmem_limit_bytes=_VMEM_LIMIT),
        cost_estimate=cost,
    )(patches, w_mat, bias_row)


# ---------------------------------------------------------------------------
# Module equivalent
# ---------------------------------------------------------------------------
def _nearest_resize(x, out_hw):
    """F.interpolate(x, size=out_hw, mode='nearest') on an NCHW tensor."""
    _, _, hin, win = x.shape
    oh, ow = out_hw
    if (hin, win) == (oh, ow):
        return x
    idx_h = jnp.minimum((jnp.arange(oh) * hin) // oh, hin - 1)
    idx_w = jnp.minimum((jnp.arange(ow) * win) // ow, win - 1)
    return x[:, :, idx_h[:, None], idx_w[None, :]]


class UpsamplerPallas:
    """Pallas equivalent of the PyTorch `Upsampler` module (NCHW in/out)."""

    def __init__(self, in_channels: int, out_channels: int,
                 out_size: Tuple[int, int], key,
                 compute_dtype=jnp.float32, out_dtype=None,
                 row_tile_cap: Optional[int] = None):
        self.in_channels = in_channels
        self.out_channels = out_channels
        self.out_size = (int(out_size[0]), int(out_size[1]))
        self.out_HW = (self.out_size[0] * 2, self.out_size[1] * 2)
        self.compute_dtype = compute_dtype
        # bf16 compute also writes bf16 output (halved writeback); f32 default
        # preserves the PyTorch module's numerics.
        self.out_dtype = (jnp.dtype(out_dtype) if out_dtype is not None
                          else jnp.dtype(compute_dtype))
        self.row_tile_cap = row_tile_cap      # tuning/testing knob

        # Deterministic init mimicking nn.Conv2d default U(-1/sqrt(fan_in), ..).
        fan_in = in_channels * 9
        bound = 1.0 / math.sqrt(fan_in)
        kw_key, kb_key = jax.random.split(key)
        # PyTorch conv weight layout: (C_out, C_in, KH, KW)
        self.weight = jax.random.uniform(
            kw_key, (out_channels, in_channels, 3, 3),
            minval=-bound, maxval=bound, dtype=jnp.float32)
        self.bias = jax.random.uniform(
            kb_key, (out_channels,), minval=-bound, maxval=bound,
            dtype=jnp.float32)

    # -- folded fast path (exact nearest-2x upsample) -------------------------
    def _forward_folded(self, x):
        n, cin, h, w = x.shape
        cout = self.out_channels
        cdt = self.compute_dtype
        wt = self.weight                                   # (Cout, Cin, 3, 3)
        w2 = jnp.stack([
            jnp.stack([wt[:, :, 0, 0],
                       wt[:, :, 0, 1] + wt[:, :, 0, 2]], axis=0),
            jnp.stack([wt[:, :, 1, 0] + wt[:, :, 2, 0],
                       wt[:, :, 1, 1] + wt[:, :, 1, 2]
                       + wt[:, :, 2, 1] + wt[:, :, 2, 2]], axis=0),
        ], axis=0)                                         # (2, 2, Cout, Cin)
        w2 = jnp.transpose(w2, (0, 1, 3, 2)).astype(cdt)   # (2, 2, Cin, Cout)

        # Single fused XLA producer: NCHW->NHWC transpose + cast + the 1-row/1-col
        # zero pad of the folded conv.  TODO(synk): take NHWC activations directly
        # (and fold the pad into the kernel) to drop this activation copy.
        xp = jnp.pad(jnp.transpose(x, (0, 2, 3, 1)).astype(cdt),
                     ((0, 0), (1, 0), (1, 0), (0, 0)))

        in_item = jnp.dtype(cdt).itemsize
        out_item = jnp.dtype(self.out_dtype).itemsize
        tr = _pick_row_tile(h, w, cin, cout, in_item, out_item, n, _VMEM_BUDGET)
        if self.row_tile_cap is not None:
            tr = max(1, min(tr, int(self.row_tile_cap)))
        out = _fold_conv(xp, w2, self.bias.reshape(1, cout), tr, self.out_dtype)
        return jnp.transpose(out, (0, 3, 1, 2))            # (N, Cout, H, W)

    # -- general fallback (arbitrary nearest resize ratio) ---------------------
    def _forward_general(self, x):
        n = x.shape[0]
        cin, cout = self.in_channels, self.out_channels
        cdt = self.compute_dtype
        oh, ow = self.out_size

        h = _nearest_resize(x, self.out_HW)                 # (N, Cin, 2*oh, 2*ow)
        h = jnp.transpose(h, (0, 2, 3, 1)).astype(cdt)      # NHWC
        hp = jnp.pad(h, ((0, 0), (1, 1), (1, 1), (0, 0)))
        cols = []
        for kh in range(3):
            for kw in range(3):
                cols.append(hp[:, kh:kh + 2 * oh - 1:2, kw:kw + 2 * ow - 1:2, :])
        patches = jnp.concatenate(cols, axis=-1).reshape(n * oh * ow, 9 * cin)
        w_mat = jnp.transpose(self.weight, (2, 3, 1, 0)).reshape(
            9 * cin, cout).astype(cdt)
        out = _conv_as_matmul(patches, w_mat, self.bias.reshape(1, cout),
                              self.out_dtype)
        return jnp.transpose(out.reshape(n, oh, ow, cout), (0, 3, 1, 2))

    def __call__(self, x):
        n, cin, hin, win = x.shape
        assert cin == self.in_channels
        if (hin, win) == self.out_size:
            # The interpolate is an exact nearest-2x upsample: fold it into a 2x2
            # stride-1 conv on the original input (no upsampled tensor, no im2col
            # patch matrix ever materialised in HBM).
            return self._forward_folded(x)
        return self._forward_general(x)


# ---------------------------------------------------------------------------
# Pure-JAX reference for correctness checks
# ---------------------------------------------------------------------------
def _reference(mod: UpsamplerPallas, x):
    h = _nearest_resize(x, mod.out_HW)
    y = jax.lax.conv_general_dilated(
        h, mod.weight, window_strides=(2, 2), padding=((1, 1), (1, 1)),
        dimension_numbers=("NCHW", "OIHW", "NCHW"))
    return y + mod.bias[None, :, None, None]


if __name__ == "__main__":
    key = jax.random.PRNGKey(0)
    k1, k2, k3, kp = jax.random.split(key, 4)

    N, C_in, C_out = 2, 4, 8
    out_size = (8, 8)
    mod = UpsamplerPallas(C_in, C_out, out_size, kp)

    # 1) input already at 2*out_size -> identity resize, general (matmul) path.
    x1 = jax.random.normal(k1, (N, C_in, 16, 16), dtype=jnp.float32)
    y1 = jax.block_until_ready(mod(x1))
    assert y1.shape == (N, C_out, out_size[0], out_size[1]), y1.shape
    r1 = jax.block_until_ready(_reference(mod, x1))
    assert jnp.allclose(y1, r1, atol=1e-4, rtol=1e-4), float(jnp.max(jnp.abs(y1 - r1)))

    # 2) input at out_size -> exact nearest-2x upsample, folded fused-conv path.
    x2 = jax.random.normal(k2, (N, C_in, 8, 8), dtype=jnp.float32)
    y2 = jax.block_until_ready(mod(x2))
    assert y2.shape == (N, C_out, out_size[0], out_size[1]), y2.shape
    r2 = jax.block_until_ready(_reference(mod, x2))
    assert jnp.allclose(y2, r2, atol=1e-4, rtol=1e-4), float(jnp.max(jnp.abs(y2 - r2)))

    # 3) non-trivial nearest-resize ratio -> general path with a real resize.
    x3 = jax.random.normal(k3, (N, C_in, 6, 6), dtype=jnp.float32)
    y3 = jax.block_until_ready(mod(x3))
    r3 = jax.block_until_ready(_reference(mod, x3))
    assert jnp.allclose(y3, r3, atol=1e-4, rtol=1e-4), float(jnp.max(jnp.abs(y3 - r3)))

    # 4) forced multi-row-tile grid on the folded path (exercises the cross-tile
    #    overlap row and the ragged/divisor row-tiling logic).
    mod_tiled = UpsamplerPallas(C_in, C_out, out_size, kp, row_tile_cap=2)
    y5 = jax.block_until_ready(mod_tiled(x2))
    assert jnp.allclose(y5, r2, atol=1e-4, rtol=1e-4), float(jnp.max(jnp.abs(y5 - r2)))

    # 5) bf16 activations/weights on the MXU (f32 accumulate, bf16 writeback).
    mod_bf16 = UpsamplerPallas(C_in, C_out, out_size, kp, compute_dtype=jnp.bfloat16)
    y4 = jax.block_until_ready(mod_bf16(x2))
    assert y4.dtype == jnp.bfloat16
    assert jnp.allclose(y4, r2, atol=1e-1, rtol=1e-1), float(jnp.max(jnp.abs(y4 - r2)))

    print("KERNEL_OK")
</pallas_src>

<mosaic_0001>
module attributes {stable_mosaic.version = 11 : i64} {
  func.func @_matmul_bias_kernel(%arg0: i32, %arg1: i32, %arg2: memref<128x36xf32, #tpu.memory_space<vmem>>, %arg3: memref<36x8xf32, #tpu.memory_space<vmem>>, %arg4: memref<1x8xf32, #tpu.memory_space<vmem>>, %arg5: memref<128x8xf32, #tpu.memory_space<vmem>>, %arg6: memref<128x8xf32, #tpu.memory_space<vmem>>) attributes {dimension_semantics = [#tpu.dimension_semantics<parallel>, #tpu.dimension_semantics<arbitrary>], iteration_bounds = array<i64: 1, 1>, scalar_prefetch = 0 : i64, scratch_operands = 1 : i64, tpu.core_type = #tpu.core_type<tc>, window_params = [{transform_indices = @transform_0, window_bounds = array<i64: 128, 36>}, {transform_indices = @transform_1, window_bounds = array<i64: 36, 8>}, {pipeline_mode = #tpu.pipeline_mode<synchronous>, transform_indices = @transform_2, window_bounds = array<i64: 1, 8>}, {transform_indices = @transform_3, window_bounds = array<i64: 128, 8>}]} {
    %c0_i32 = arith.constant 0 : i32
    %0 = arith.cmpi eq, %arg1, %c0_i32 : i32
    %1 = arith.extui %0 : i1 to i32
    %c0_i32_0 = arith.constant 0 : i32
    %2 = arith.cmpi ne, %1, %c0_i32_0 : i32
    scf.if %2 {
      %cst_10 = arith.constant 0.000000e+00 : f32
      %12 = vector.broadcast %cst_10 : f32 to vector<128x8xf32>
      %c0_11 = arith.constant 0 : index
      %c0_12 = arith.constant 0 : index
      %13 = vector.load %arg6[%c0_11, %c0_12] : memref<128x8xf32, #tpu.memory_space<vmem>>, vector<128x8xf32>
      tpu.vector_store %arg6[%c0_11, %c0_12], %12 {strides = array<i32>} : memref<128x8xf32, #tpu.memory_space<vmem>>, vector<128x8xf32>,
    } else {
    }
    %c0 = arith.constant 0 : index
    %c0_1 = arith.constant 0 : index
    %3 = vector.load %arg6[%c0, %c0_1] : memref<128x8xf32, #tpu.memory_space<vmem>>, vector<128x8xf32>
    %c0_2 = arith.constant 0 : index
    %c0_3 = arith.constant 0 : index
    %4 = vector.load %arg2[%c0_2, %c0_3] : memref<128x36xf32, #tpu.memory_space<vmem>>, vector<128x36xf32>
    %c0_4 = arith.constant 0 : index
    %c0_5 = arith.constant 0 : index
    %5 = vector.load %arg3[%c0_4, %c0_5] : memref<36x8xf32, #tpu.memory_space<vmem>>, vector<36x8xf32>
    %cst = arith.constant dense<0.000000e+00> : vector<128x8xf32>
    %6 = tpu.matmul %4, %5, %cst {dimension_numbers = #tpu.dot_dimension_numbers<[1], [0], [0], [1], [0, 0, 1, 1], [], []>} : vector<128x36xf32>, vector<36x8xf32>, vector<128x8xf32> -> vector<128x8xf32>
    %7 = arith.addf %3, %6 : vector<128x8xf32>
    %c0_6 = arith.constant 0 : index
    %c0_7 = arith.constant 0 : index
    %8 = vector.load %arg6[%c0_6, %c0_7] : memref<128x8xf32, #tpu.memory_space<vmem>>, vector<128x8xf32>
    tpu.vector_store %arg6[%c0_6, %c0_7], %7 {strides = array<i32>} : memref<128x8xf32, #tpu.memory_space<vmem>>, vector<128x8xf32>,
    %c0_i32_8 = arith.constant 0 : i32
    %9 = arith.cmpi eq, %arg1, %c0_i32_8 : i32
    %10 = arith.extui %9 : i1 to i32
    %c0_i32_9 = arith.constant 0 : i32
    %11 = arith.cmpi ne, %10, %c0_i32_9 : i32
    scf.if %11 {
      %c0_10 = arith.constant 0 : index
      %c0_11 = arith.constant 0 : index
      %12 = vector.load %arg6[%c0_10, %c0_11] : memref<128x8xf32, #tpu.memory_space<vmem>>, vector<128x8xf32>
      %c0_12 = arith.constant 0 : index
      %c0_13 = arith.constant 0 : index
      %13 = vector.load %arg4[%c0_12, %c0_13] : memref<1x8xf32, #tpu.memory_space<vmem>>, vector<1x8xf32>
      %14 = vector.broadcast %13 : vector<1x8xf32> to vector<128x8xf32>
      %15 = arith.addf %12, %14 : vector<128x8xf32>
      %c0_14 = arith.constant 0 : index
      %c0_15 = arith.constant 0 : index
      %16 = vector.load %arg5[%c0_14, %c0_15] : memref<128x8xf32, #tpu.memory_space<vmem>>, vector<128x8xf32>
      tpu.vector_store %arg5[%c0_14, %c0_15], %15 {strides = array<i32>} : memref<128x8xf32, #tpu.memory_space<vmem>>, vector<128x8xf32>,
    } else {
    }
    return
  }
  func.func @transform_0(%arg0: i32, %arg1: i32) -> (i32, i32) {
    %c0_i32 = arith.constant 0 : i32
    return %arg0, %arg1 : i32, i32
  }
  func.func @transform_1(%arg0: i32, %arg1: i32) -> (i32, i32) {
    %c0_i32 = arith.constant 0 : i32
    %c0_i32_0 = arith.constant 0 : i32
    return %arg1, %c0_i32 : i32, i32
  }
  func.func @transform_2(%arg0: i32, %arg1: i32) -> (i32, i32) {
    %c0_i32 = arith.constant 0 : i32
    %c0_i32_0 = arith.constant 0 : i32
    %c0_i32_1 = arith.constant 0 : i32
    return %c0_i32, %c0_i32_0 : i32, i32
  }
  func.func @transform_3(%arg0: i32, %arg1: i32) -> (i32, i32) {
    %c0_i32 = arith.constant 0 : i32
    %c0_i32_0 = arith.constant 0 : i32
    return %arg0, %c0_i32 : i32, i32
  }
}

</mosaic_0001>

<bundles_post_ra>
// kernel: tpu_custom_call.1
= control target key start
LH: loop header
LB: loop body
LE: loop exit
PB: predicated region body
PF: predicated region fallthrough
CT: control target
= control target key end

     0   :  { %vm72_vm0 = vcmask 293888   ;;  %vm18_vm1 = vcmask 64512   ;;  %v453_v3 = vmov 0.0   ;;  %vm121_vm2 = vcmask 1043456   ;;  %s670_s1 = inlined_call_operand.vmem [shape: f32[36,8], index: 1, kind: input, shape index: {}]   ;;  %s671_s0 = inlined_call_operand.vmem [shape: f32[128,36], index: 0, kind: input, shape index: {}]   ;;  %s672_s2 = inlined_call_operand.vmem [shape: f32[1,8], index: 2, kind: input, shape index: {}]   ;;  %s673_s3 = inlined_call_operand.vmem [shape: f32[128,8], index: 3, kind: output, shape index: {}]  }
   0x1   :  { %v67_v0 = vld [vmem:[%s670_s1] sm:$0xff]  ;;  %v68_v1 = vld [vmem:[%s670_s1 + $0x8] sm:$0xff]  ;;  %v69_v2 = vld [vmem:[%s670_s1 + $0x10] sm:$0xff]  ;;  %20 = vst.msk [vmem:[#allocation2 + $0x8] sm:$0xff] %vm18_vm1, %v453_v3 }
   0x2   :  { %19 = vst.msk [vmem:[#allocation2] sm:$0xff] %vm18_vm1, %v453_v3  ;;  %21 = vst.msk [vmem:[#allocation2 + $0x10] sm:$0xff] %vm18_vm1, %v453_v3  ;;  %v438_v4 = vpack.c.bf16 %v68_v1, %v67_v0  ;;  %v70_v5 = vld [vmem:[%s670_s1 + $0x18] sm:$0xff]  ;;  %v51_v6 = vld [vmem:[%s671_s0] sm:$0xff] }
   0x3   :  { %22 = vst.msk [vmem:[#allocation2 + $0x18] sm:$0xff] %vm18_vm1, %v453_v3  ;;  %23 = vst.msk [vmem:[#allocation2 + $0x20] sm:$0xff] %vm18_vm1, %v453_v3  ;;  %v442_v7 = vpack.c.bf16 %v70_v5, %v69_v2  ;;  %414 = vmatprep.mubr.msk.f32.mxu0 %vm72_vm0, %v51_v6  ;;  %v59_v8 = vld [vmem:[%s671_s0 + $0x40] sm:$0xff]  ;;  %v52_v10 = vld [vmem:[%s671_s0 + $0x8] sm:$0xff] }
   0x4   :  { %24 = vst.msk [vmem:[#allocation2 + $0x28] sm:$0xff] %vm18_vm1, %v453_v3  ;;  %25 = vst.msk [vmem:[#allocation2 + $0x30] sm:$0xff] %vm18_vm1, %v453_v3  ;;  %439 = vmatprep.subr.bf16.mxu0 %v438_v4  ;;  %446 = vmatprep.subr.bf16.mxu1 %v438_v4  ;;  %v71_v9 = vld [vmem:[%s670_s1 + $0x20] sm:$0xf]  ;;  %v60_v11 = vld [vmem:[%s671_s0 + $0x48] sm:$0xff] }
   0x5   :  { %26 = vst.msk [vmem:[#allocation2 + $0x38] sm:$0xff] %vm18_vm1, %v453_v3  ;;  %27 = vst.msk [vmem:[#allocation2 + $0x40] sm:$0xff] %vm18_vm1, %v453_v3  ;;  %441 = vmatpush3.bf16.msra.mxu0 %v438_v4  ;;  %449 = vmatpush3.bf16.msra.mxu1 %v438_v4  ;;  %v53_v12 = vld [vmem:[%s671_s0 + $0x10] sm:$0xff]  ;;  %v54_v14 = vld [vmem:[%s671_s0 + $0x18] sm:$0xff] }
   0x6   :  { %28 = vst.msk [vmem:[#allocation2 + $0x48] sm:$0xff] %vm18_vm1, %v453_v3  ;;  %29 = vst.msk [vmem:[#allocation2 + $0x50] sm:$0xff] %vm18_vm1, %v453_v3  ;;  %443 = vmatprep.subr.bf16.mxu0 %v442_v7  ;;  %447 = vmatprep.subr.bf16.mxu1 %v442_v7  ;;  %v61_v13 = vld [vmem:[%s671_s0 + $0x50] sm:$0xff]  ;;  %v62_v15 = vld [vmem:[%s671_s0 + $0x58] sm:$0xff] }
   0x7   :  { %30 = vst.msk [vmem:[#allocation2 + $0x58] sm:$0xff] %vm18_vm1, %v453_v3  ;;  %31 = vst.msk [vmem:[#allocation2 + $0x60] sm:$0xff] %vm18_vm1, %v453_v3  ;;  %426 = vmatprep.mubr.msk.f32.mxu1 %vm72_vm0, %v59_v8  ;;  %v55_v16 = vld [vmem:[%s671_s0 + $0x20] sm:$0xff]  ;;  %v56_v18 = vld [vmem:[%s671_s0 + $0x28] sm:$0xff] }
   0x8   :  { %32 = vst.msk [vmem:[#allocation2 + $0x68] sm:$0xff] %vm18_vm1, %v453_v3  ;;  %33 = vst.msk [vmem:[#allocation2 + $0x70] sm:$0xff] %vm18_vm1, %v453_v3  ;;  %v63_v17 = vld [vmem:[%s671_s0 + $0x60] sm:$0xff]  ;;  %v64_v19 = vld [vmem:[%s671_s0 + $0x68] sm:$0xff] }
   0x9   :  { %34 = vst.msk [vmem:[#allocation2 + $0x78] sm:$0xff] %vm18_vm1, %v453_v3  ;;  %445 = vmatpush3.bf16.msra.mxu0 %v442_v7  ;;  %450 = vmatpush3.bf16.msra.mxu1 %v442_v7  ;;  %v57_v20 = vld [vmem:[%s671_s0 + $0x30] sm:$0xff]  ;;  %v58_v22 = vld [vmem:[%s671_s0 + $0x38] sm:$0xff]  ;;  %v36_v24 = vld [vmem:[#allocation2 + $0x8] sm:$0xff] }
   0xa   :  { %412 = vmatprep.subr.msk.mxu0 %vm121_vm2, %v71_v9  ;;  %448 = vmatprep.subr.msk.mxu1 %vm121_vm2, %v71_v9  ;;  %v65_v21 = vld [vmem:[%s671_s0 + $0x70] sm:$0xff]  ;;  %v66_v23 = vld [vmem:[%s671_s0 + $0x78] sm:$0xff]  ;;  %v35_v26 = vld [vmem:[#allocation2] sm:$0xff] }
   0xb   :  { %v38_v36 = vld [vmem:[#allocation2 + $0x18] sm:$0xff]  ;;  %v37_v38 = vld [vmem:[#allocation2 + $0x10] sm:$0xff]  ;;  %v40_v48 = vld [vmem:[#allocation2 + $0x28] sm:$0xff] }
   0xc   :  { %v43_v27 = vld [vmem:[#allocation2 + $0x40] sm:$0xff]  ;;  %v42_v59 = vld [vmem:[#allocation2 + $0x38] sm:$0xff]  ;;  %v41_v1 = vld [vmem:[#allocation2 + $0x30] sm:$0xff] }
   0xd   :  { %413 = vmatpush3.msk.msra.mxu0 %vm121_vm2, %v71_v9  ;;  %451 = vmatpush3.msk.msra.mxu1 %vm121_vm2, %v71_v9  ;;  %v44_v25 = vld [vmem:[#allocation2 + $0x48] sm:$0xff]  ;;  %v45_v39 = vld [vmem:[#allocation2 + $0x50] sm:$0xff]  ;;  %v39_v50 = vld [vmem:[#allocation2 + $0x20] sm:$0xff] }
   0xe   :  { %415 = vmatmul.mubr.msk.f32.vlgmr.msra.gmra.mrb[0].mxu0 %vm72_vm0, %v52_v10  ;;  %427 = vmatmul.mubr.msk.f32.vlgmr.msra.gmra.mrb[0].mxu1 %vm72_vm0, %v60_v11  ;;  %v46_v37 = vld [vmem:[#allocation2 + $0x58] sm:$0xff]  ;;  %v47_v51 = vld [vmem:[#allocation2 + $0x60] sm:$0xff] }
   0xf   :  { %417 = vmatprep.mubr.msk.f32.mxu0 %vm72_vm0, %v53_v12  ;;  %429 = vmatprep.mubr.msk.f32.mxu1 %vm72_vm0, %v61_v13  ;;  %v48_v49 = vld [vmem:[#allocation2 + $0x68] sm:$0xff]  ;;  %v578_v52 = vld [vmem:[%s672_s2] ss:$0 sm:$0xff]  ;;  %v49_v6 = vld [vmem:[#allocation2 + $0x70] sm:$0xff] }
  0x10   :  { %v50_v60 = vld [vmem:[#allocation2 + $0x78] sm:$0xff] }
  0x12   :  { %418 = vmatmul.mubr.msk.f32.gmra.mrb[2].mxu0 %vm72_vm0, %v54_v14  ;;  %430 = vmatmul.mubr.msk.f32.gmra.mrb[2].mxu1 %vm72_vm0, %v62_v15 }
  0x13   :  { %420 = vmatprep.mubr.msk.f32.mxu0 %vm72_vm0, %v55_v16  ;;  %432 = vmatprep.mubr.msk.f32.mxu1 %vm72_vm0, %v63_v17 }
  0x16   :  { %421 = vmatmul.mubr.msk.f32.gmra.mrb[4].mxu0 %vm72_vm0, %v56_v18  ;;  %433 = vmatmul.mubr.msk.f32.gmra.mrb[4].mxu1 %vm72_vm0, %v64_v19 }
  0x17   :  { %423 = vmatprep.mubr.msk.f32.mxu0 %vm72_vm0, %v57_v20  ;;  %435 = vmatprep.mubr.msk.f32.mxu1 %vm72_vm0, %v65_v21 }
  0x1a   :  { %424 = vmatmul.mubr.msk.f32.gmra.mrb[6].mxu0 %vm72_vm0, %v58_v22  ;;  %436 = vmatmul.mubr.msk.f32.gmra.mrb[6].mxu1 %vm72_vm0, %v66_v23 }
  0xe1   :  { %v416_v28 = vpop.f32.mrb[0].mxu0  ;;  %v428_v29 = vpop.f32.mrb[0].mxu1 }
  0xe2   :  { %v271_v30 = vadd.f32 %v416_v28, %v36_v24  ;;  %v279_v31 = vadd.f32 %v428_v29, %v44_v25  ;;  %v191_v32 = vpop.f32.mrb[1].mxu0  ;;  %v231_v33 = vpop.f32.mrb[1].mxu1 }
  0xe3   :  { %v270_v34 = vadd.f32 %v191_v32, %v35_v26  ;;  %v278_v35 = vadd.f32 %v231_v33, %v43_v27 }
  0xe4   :  { %288 = vst.msk [vmem:[#allocation2 + $0x8] sm:$0xff] %vm18_vm1, %v271_v30  ;;  %296 = vst.msk [vmem:[#allocation2 + $0x48] sm:$0xff] %vm18_vm1, %v279_v31 }
  0xe5   :  { %287 = vst.msk [vmem:[#allocation2] sm:$0xff] %vm18_vm1, %v270_v34  ;;  %295 = vst.msk [vmem:[#allocation2 + $0x40] sm:$0xff] %vm18_vm1, %v278_v35  ;;  %v419_v40 = vpop.f32.mrb[2].mxu0  ;;  %v431_v41 = vpop.f32.mrb[2].mxu1 }
  0xe6   :  { %v273_v42 = vadd.f32 %v419_v40, %v38_v36  ;;  %v281_v43 = vadd.f32 %v431_v41, %v46_v37  ;;  %v201_v44 = vpop.f32.mrb[3].mxu0  ;;  %v241_v45 = vpop.f32.mrb[3].mxu1 }
  0xe7   :  { %v272_v46 = vadd.f32 %v201_v44, %v37_v38  ;;  %v280_v47 = vadd.f32 %v241_v45, %v45_v39 }
  0xe8   :  { %290 = vst.msk [vmem:[#allocation2 + $0x18] sm:$0xff] %vm18_vm1, %v273_v42  ;;  %298 = vst.msk [vmem:[#allocation2 + $0x58] sm:$0xff] %vm18_vm1, %v281_v43 }
  0xe9   :  { %289 = vst.msk [vmem:[#allocation2 + $0x10] sm:$0xff] %vm18_vm1, %v272_v46  ;;  %297 = vst.msk [vmem:[#allocation2 + $0x50] sm:$0xff] %vm18_vm1, %v280_v47  ;;  %v422_v53 = vpop.f32.mrb[4].mxu0  ;;  %v434_v54 = vpop.f32.mrb[4].mxu1 }
  0xea   :  { %v275_v55 = vadd.f32 %v422_v53, %v40_v48  ;;  %v283_v56 = vadd.f32 %v434_v54, %v48_v49  ;;  %v211_v57 = vpop.f32.mrb[5].mxu0  ;;  %v251_v58 = vpop.f32.mrb[5].mxu1 }
  0xeb   :  { %v307_v61 = vld [vmem:[#allocation2 + $0x8] sm:$0xff]  ;;  %v274_v63 = vadd.f32 %v211_v57, %v39_v50  ;;  %v282_v0 = vadd.f32 %v251_v58, %v47_v51 }
  0xec   :  { %v315_v62 = vld [vmem:[#allocation2 + $0x48] sm:$0xff]  ;;  %v330_v2 = vadd.f32 %v578_v52, %v307_v61  ;;  %v306_v4 = vld [vmem:[#allocation2] sm:$0xff]  ;;  %292 = vst.msk [vmem:[#allocation2 + $0x28] sm:$0xff] %vm18_vm1, %v275_v55  ;;  %300 = vst.msk [vmem:[#allocation2 + $0x68] sm:$0xff] %vm18_vm1, %v283_v56 }
  0xed   :  { %v338_v3 = vadd.f32 %v578_v52, %v315_v62  ;;  %v314_v5 = vld [vmem:[#allocation2 + $0x40] sm:$0xff]  ;;  %v329_v7 = vadd.f32 %v578_v52, %v306_v4  ;;  %291 = vst.msk [vmem:[#allocation2 + $0x20] sm:$0xff] %vm18_vm1, %v274_v63  ;;  %299 = vst.msk [vmem:[#allocation2 + $0x60] sm:$0xff] %vm18_vm1, %v282_v0  ;;  %v425_v9 = vpop.f32.mrb[6].mxu0  ;;  %v437_v10 = vpop.f32.mrb[6].mxu1 }
  0xee   :  { %v337_v8 = vadd.f32 %v578_v52, %v314_v5  ;;  %346 = vst.msk [vmem:[%s673_s3 + $0x8] sm:$0xff] %vm18_vm1, %v330_v2  ;;  %v277_v11 = vadd.f32 %v425_v9, %v42_v59  ;;  %v285_v12 = vadd.f32 %v437_v10, %v50_v60  ;;  %v221_v13 = vpop.f32.mrb[7].mxu0  ;;  %v261_v14 = vpop.f32.mrb[7].mxu1 }
  0xef   :  { %354 = vst.msk [vmem:[%s673_s3 + $0x48] sm:$0xff] %vm18_vm1, %v338_v3  ;;  %345 = vst.msk [vmem:[%s673_s3] sm:$0xff] %vm18_vm1, %v329_v7  ;;  %v309_v15 = vld [vmem:[#allocation2 + $0x18] sm:$0xff]  ;;  %v276_v17 = vadd.f32 %v221_v13, %v41_v1  ;;  %v284_v18 = vadd.f32 %v261_v14, %v49_v6 }
  0xf0   :  { %353 = vst.msk [vmem:[%s673_s3 + $0x40] sm:$0xff] %vm18_vm1, %v337_v8  ;;  %v317_v16 = vld [vmem:[#allocation2 + $0x58] sm:$0xff]  ;;  %v332_v19 = vadd.f32 %v578_v52, %v309_v15  ;;  %v308_v21 = vld [vmem:[#allocation2 + $0x10] sm:$0xff]  ;;  %294 = vst.msk [vmem:[#allocation2 + $0x38] sm:$0xff] %vm18_vm1, %v277_v11 }
  0xf1   :  { %v340_v20 = vadd.f32 %v578_v52, %v317_v16  ;;  %v316_v22 = vld [vmem:[#allocation2 + $0x50] sm:$0xff]  ;;  %302 = vst.msk [vmem:[#allocation2 + $0x78] sm:$0xff] %vm18_vm1, %v285_v12  ;;  %v331_v23 = vadd.f32 %v578_v52, %v308_v21  ;;  %293 = vst.msk [vmem:[#allocation2 + $0x30] sm:$0xff] %vm18_vm1, %v276_v17 }
  0xf2   :  { %v339_v24 = vadd.f32 %v578_v52, %v316_v22  ;;  %301 = vst.msk [vmem:[#allocation2 + $0x70] sm:$0xff] %vm18_vm1, %v284_v18  ;;  %348 = vst.msk [vmem:[%s673_s3 + $0x18] sm:$0xff] %vm18_vm1, %v332_v19 }
  0xf3   :  { %356 = vst.msk [vmem:[%s673_s3 + $0x58] sm:$0xff] %vm18_vm1, %v340_v20  ;;  %347 = vst.msk [vmem:[%s673_s3 + $0x10] sm:$0xff] %vm18_vm1, %v331_v23  ;;  %v311_v25 = vld [vmem:[#allocation2 + $0x28] sm:$0xff] }
  0xf4   :  { %355 = vst.msk [vmem:[%s673_s3 + $0x50] sm:$0xff] %vm18_vm1, %v339_v24  ;;  %v319_v26 = vld [vmem:[#allocation2 + $0x68] sm:$0xff]  ;;  %v334_v27 = vadd.f32 %v578_v52, %v311_v25  ;;  %v310_v29 = vld [vmem:[#allocation2 + $0x20] sm:$0xff] }
  0xf5   :  { %v342_v28 = vadd.f32 %v578_v52, %v319_v26  ;;  %v318_v30 = vld [vmem:[#allocation2 + $0x60] sm:$0xff]  ;;  %v333_v31 = vadd.f32 %v578_v52, %v310_v29 }
  0xf6   :  { %v341_v32 = vadd.f32 %v578_v52, %v318_v30  ;;  %350 = vst.msk [vmem:[%s673_s3 + $0x28] sm:$0xff] %vm18_vm1, %v334_v27 }
  0xf7   :  { %358 = vst.msk [vmem:[%s673_s3 + $0x68] sm:$0xff] %vm18_vm1, %v342_v28  ;;  %349 = vst.msk [vmem:[%s673_s3 + $0x20] sm:$0xff] %vm18_vm1, %v333_v31  ;;  %v313_v33 = vld [vmem:[#allocation2 + $0x38] sm:$0xff] }
  0xf8   :  { %357 = vst.msk [vmem:[%s673_s3 + $0x60] sm:$0xff] %vm18_vm1, %v341_v32  ;;  %v321_v34 = vld [vmem:[#allocation2 + $0x78] sm:$0xff]  ;;  %v336_v35 = vadd.f32 %v578_v52, %v313_v33  ;;  %v312_v37 = vld [vmem:[#allocation2 + $0x30] sm:$0xff] }
  0xf9   :  { %v344_v36 = vadd.f32 %v578_v52, %v321_v34  ;;  %v320_v38 = vld [vmem:[#allocation2 + $0x70] sm:$0xff]  ;;  %v335_v39 = vadd.f32 %v578_v52, %v312_v37 }
  0xfa   :  { %v343_v40 = vadd.f32 %v578_v52, %v320_v38  ;;  %352 = vst.msk [vmem:[%s673_s3 + $0x38] sm:$0xff] %vm18_vm1, %v336_v35 }
  0xfb   :  { %360 = vst.msk [vmem:[%s673_s3 + $0x78] sm:$0xff] %vm18_vm1, %v344_v36  ;;  %351 = vst.msk [vmem:[%s673_s3 + $0x30] sm:$0xff] %vm18_vm1, %v335_v39 }
  0xfc   :  { %359 = vst.msk [vmem:[%s673_s3 + $0x70] sm:$0xff] %vm18_vm1, %v343_v40 }

</bundles_post_ra>
